<compile_context>
chip_gen: v6e
topology: v6e:2x2x1
jax: 0.10.0
libtpu: 0.0.40
codegen_flags: <defaults>
</compile_context>

<pallas_src>
import functools

import jax
import jax.numpy as jnp
from jax.experimental import pallas as pl
from jax.experimental.pallas import tpu as pltpu

PROJ_DIM = 32          # nn.Linear(input_dim // 2, 32)


def _round_up(x, m):
    return ((x + m - 1) // m) * m


# ---------------------------------------------------------------------------
# Kernel 1: attention scores   score_o = mean_t ReLU( norm(q_o) . norm(k_t) )
# ---------------------------------------------------------------------------
def _scores_kernel(oth_ref, kn_ref, wq_ref, bq_ref, out_ref):
    # oth_ref : (1, TO, Dh)   other-token tile (last-half feats), bf16 or f32
    # kn_ref  : (1, T, 32)    pre-normalized target projections * (1/T), f32
    # wq_ref  : (Dh, 32)      q projection weight (same dtype as oth)
    # bq_ref  : (1, 32)       q projection bias, f32
    # out_ref : (1, 1, TO)    lane-dense scores for this O tile, f32
    oth = oth_ref[0]                                                 # (TO, Dh)

    q = jnp.dot(oth, wq_ref[...],
                preferred_element_type=jnp.float32) + bq_ref[...]    # (TO, 32) f32
    # L2 normalisation on the EUP (rsqrt); eps avoids NaN on zero vectors.
    qn = q * jax.lax.rsqrt(jnp.sum(q * q, axis=-1, keepdims=True) + 1e-12)

    kn = kn_ref[0]                                                   # (T, 32) f32
    sims = jax.lax.dot_general(kn, qn, (((1,), (1,)), ((), ())),
                               preferred_element_type=jnp.float32)   # (T, TO)
    sims = jnp.maximum(sims, 0.0)                 # the module's "silu" is nn.ReLU
    # 1/T is folded into kn, so the mean over targets is just this sum.
    out_ref[...] = jnp.sum(sims, axis=0, keepdims=True)[None]        # (1, 1, TO)


def _choose_o_tiling(O, B):
    o128 = _round_up(max(O, 128), 128)
    tile = min(512, o128)                    # 512-wide tiles (~85% of HBM roofline)
    o_pad = _round_up(o128, tile)
    n = o_pad // tile
    # v7x has 2 TensorCores: avoid a degenerate (1, 1) grid when B == 1.
    if B == 1 and n == 1 and tile % 256 == 0:
        tile //= 2
        n = 2
    return o_pad, tile, n


def attention_scores(other_half, kn, wq, bq, *, input_dtype=jnp.bfloat16):
    B, O, Dh = other_half.shape
    T = kn.shape[1]
    o_pad, tile_o, n_tiles = _choose_o_tiling(O, B)
    if o_pad != O:
        other_half = jnp.pad(other_half, ((0, 0), (0, o_pad - O), (0, 0)))
    if input_dtype is not None:
        # Halve HBM bytes of the dominant operand; accumulation stays f32.
        other_half = other_half.astype(input_dtype)
        wq = wq.astype(input_dtype)

    out = pl.pallas_call(
        _scores_kernel,
        out_shape=jax.ShapeDtypeStruct((B, 1, o_pad), jnp.float32),
        grid=(B, n_tiles),
        in_specs=[
            pl.BlockSpec((1, tile_o, Dh), lambda b, o: (b, o, 0)),
            pl.BlockSpec((1, T, PROJ_DIM), lambda b, o: (b, 0, 0)),   # resident per batch
            pl.BlockSpec((Dh, PROJ_DIM), lambda b, o: (0, 0)),
            pl.BlockSpec((1, PROJ_DIM), lambda b, o: (0, 0)),
        ],
        out_specs=pl.BlockSpec((1, 1, tile_o), lambda b, o: (b, 0, o)),
        compiler_params=pltpu.CompilerParams(
            dimension_semantics=("parallel", "parallel")),
    )(other_half, kn, wq, bq)
    return out[:, 0, :O]                                              # (B, O)


# ---------------------------------------------------------------------------
# Kernel 2: softmax-weighted group fusion (one call per fusion-plan entry)
# ---------------------------------------------------------------------------
def _group_fuse_kernel(tok_ref, sc_ref, out_ref):
    # tok_ref : (1, TG, S, Dp)  gathered tokens (bf16), D zero-padded to Dp
    # sc_ref  : (1, TG, S)      gathered scores, f32
    # out_ref : (1, TG, Dp)     group_tokens * group_scores, f32
    tok = tok_ref[0].astype(jnp.float32)                          # (TG, S, Dp)
    sc = sc_ref[0]                                                # (TG, S)

    m = jnp.max(sc, axis=-1, keepdims=True)
    e = jnp.exp(sc - m)
    w = e / jnp.sum(e, axis=-1, keepdims=True)    # exact softmax (mem-bound kernel)

    # VPU broadcast-multiply + sublane reduce over S (no M=1 MXU matmuls).
    group_tokens = jnp.sum(tok * w[:, :, None], axis=1)          # (TG, Dp)
    group_scores = jnp.sum(sc * w, axis=-1, keepdims=True)       # (TG, 1)

    out_ref[...] = (group_tokens * group_scores)[None]


def group_fuse(tok, sc):
    # tok: (B, G, S, D) f32 gathered tokens; sc: (B, G, S) f32 gathered scores
    B, G, S, D = tok.shape
    d_pad = _round_up(D, 128)                       # lane-dense fusion tiles / output

    # Tile along G so the bf16 token tile stays ~4 MiB (double-buffered this is
    # far under even v7x's 64 MiB VMEM) and both TensorCores get work.
    bytes_per_group = S * d_pad * 2
    tile_g = max(8, ((4 << 20) // bytes_per_group) // 8 * 8)
    if G <= tile_g:
        tile_g = G
        g_pad = G
    else:
        g_pad = _round_up(G, tile_g)

    if d_pad != D or g_pad != G:
        tok = jnp.pad(tok, ((0, 0), (0, g_pad - G), (0, 0), (0, d_pad - D)))
    if g_pad != G:
        sc = jnp.pad(sc, ((0, 0), (0, g_pad - G), (0, 0)))
    tok = tok.astype(jnp.bfloat16)                  # tokens dominate HBM traffic

    out = pl.pallas_call(
        _group_fuse_kernel,
        out_shape=jax.ShapeDtypeStruct((B, g_pad, d_pad), jnp.float32),
        grid=(B, g_pad // tile_g),
        in_specs=[
            pl.BlockSpec((1, tile_g, S, d_pad), lambda b, g: (b, g, 0, 0)),
            pl.BlockSpec((1, tile_g, S), lambda b, g: (b, g, 0)),
        ],
        out_specs=pl.BlockSpec((1, tile_g, d_pad), lambda b, g: (b, g, 0)),
        compiler_params=pltpu.CompilerParams(
            dimension_semantics=("parallel", "parallel")),
    )(tok, sc)
    return out[:, :G, :D]


# ---------------------------------------------------------------------------
# Forward pass (glue in plain JAX: sort, data-dependent gather, concat, flip)
# ---------------------------------------------------------------------------
def token_fusion_forward(x, params, num_target_tokens, limit=512,
                         fusion_ratio=0.25, init_reduce_rate=4,
                         input_dtype=jnp.bfloat16):
    # input_dtype: dtype of the big DMA'd token operands (bf16 halves HBM bytes
    # of both mem-bound kernels); set to None for full-f32 fidelity.
    wq, bq, wk, bk = params
    B, L, D = x.shape
    T = num_target_tokens
    Dh = D // 2
    O = L - T

    target_tokens = x[:, O:]                       # (B, T, D)
    other_tokens = x[:, :O]                        # (B, O, D)

    # kn = normalize(target @ wk + bk) * (1/T), computed once per batch with a
    # tiny XLA matmul; stays resident across O tiles inside kernel 1.
    k = jnp.einsum("btd,dp->btp", target_tokens[:, :, D - Dh:], wk) + bk
    kn = k * jax.lax.rsqrt(jnp.sum(k * k, axis=-1, keepdims=True) + 1e-12)
    kn = kn * (1.0 / T)           # ReLU(x/T) == ReLU(x)/T -> mean becomes a sum

    # --- Pallas kernel 1: attention scores ---------------------------------
    scores = attention_scores(other_tokens[:, :, D - Dh:], kn, wq,
                              bq.reshape(1, -1), input_dtype=input_dtype)

    # TODO(synk): descending sort + data-dependent gathers stay in XLA; an
    # in-kernel gather (scalar prefetch + per-row DMA) costs more than it
    # saves at these group sizes.
    order = jnp.argsort(-scores, axis=1)                        # descending
    sorted_scores = jnp.take_along_axis(scores, order, axis=1)

    num_keep = int(O * fusion_ratio)
    top_indices = order[:, :num_keep]
    top_tokens = jnp.take_along_axis(
        other_tokens,
        jnp.broadcast_to(top_indices[:, :, None], (B, num_keep, D)), axis=1)
    top_scores = jnp.take_along_axis(scores, top_indices, axis=1)
    fused = [top_tokens * top_scores[:, :, None]]

    # Static fusion plan, mirrors the reference while-loop exactly.
    plan = []                                      # (offset, num_groups, fusion_step)
    remaining = limit - num_keep
    fusion_step = init_reduce_rate
    offset = 0
    while remaining > 0 and fusion_step <= remaining:
        num_to_fuse = max(int(remaining * fusion_ratio), fusion_step)
        plan.append((offset, num_to_fuse // fusion_step, fusion_step))
        offset += num_to_fuse
        remaining -= num_to_fuse
        fusion_step *= init_reduce_rate
    # TODO(synk): like the reference, assumes the plan never walks past the
    # O - num_keep remaining indices (true for the module's intended configs).

    rem_idx = order[:, num_keep:]
    for off, g, s in plan:
        idx = rem_idx[:, off:off + g * s]                               # (B, g*s)
        tok = jnp.take_along_axis(
            other_tokens,
            jnp.broadcast_to(idx[:, :, None], (B, g * s, D)), axis=1
        ).reshape(B, g, s, D)
        # NB: the reference gathers *sorted_scores* with these (unsorted)
        # indices — reproduce that quirk exactly.
        sc = jnp.take_along_axis(sorted_scores, idx, axis=1).reshape(B, g, s)
        # --- Pallas kernel 2: weighted group fusion for this plan entry ----
        fused.append(group_fuse(tok, sc))

    output_tokens = jnp.concatenate(fused, axis=1)[:, :limit]
    output_tokens = jnp.concatenate([output_tokens[:, ::-1], target_tokens], axis=1)
    return output_tokens


# ---------------------------------------------------------------------------
# Pure-JAX transliteration of the PyTorch module (used only for the check)
# ---------------------------------------------------------------------------
def reference_forward(x, params, num_target_tokens, limit=512,
                      fusion_ratio=0.25, init_reduce_rate=4):
    wq, bq, wk, bk = params
    B, L, D = x.shape
    T = num_target_tokens
    Dh = D // 2
    target = x[:, L - T:]
    other = x[:, :L - T]
    O = other.shape[1]

    q = jnp.einsum("bod,dp->bop", other[:, :, D - Dh:], wq) + bq
    k = jnp.einsum("btd,dp->btp", target[:, :, D - Dh:], wk) + bk
    qn = q / jnp.linalg.norm(q, axis=-1, keepdims=True)
    kn = k / jnp.linalg.norm(k, axis=-1, keepdims=True)
    sims = jnp.maximum(jnp.einsum("btp,bop->bto", kn, qn), 0.0)
    scores = jnp.mean(sims, axis=1)

    order = jnp.argsort(-scores, axis=1)
    sorted_scores = jnp.take_along_axis(scores, order, axis=1)
    num_keep = int(O * fusion_ratio)
    top_idx = order[:, :num_keep]
    top_tok = jnp.take_along_axis(
        other, jnp.broadcast_to(top_idx[:, :, None], (B, num_keep, D)), axis=1)
    top_sc = jnp.take_along_axis(scores, top_idx, axis=1)
    fused = [top_tok * top_sc[:, :, None]]

    rem_idx = order[:, num_keep:]
    remaining = limit - num_keep
    step = init_reduce_rate
    while remaining > 0 and step <= remaining:
        num_to_fuse = max(int(remaining * fusion_ratio), step)
        g = num_to_fuse // step
        gt, gs = [], []
        for i in range(g):
            idx = rem_idx[:, i * step:(i + 1) * step]
            st = jnp.take_along_axis(
                other, jnp.broadcast_to(idx[:, :, None], (B, step, D)), axis=1)
            ss = jnp.take_along_axis(sorted_scores, idx, axis=1)
            w = jax.nn.softmax(ss, axis=1)
            gt.append(jnp.sum(st * w[:, :, None], axis=1))
            gs.append(jnp.sum(ss * w, axis=1))
        fused.append(jnp.stack(gt, axis=1) * jnp.stack(gs, axis=1)[:, :, None])
        rem_idx = rem_idx[:, num_to_fuse:]
        remaining -= num_to_fuse
        step *= init_reduce_rate

    out = jnp.concatenate(fused, axis=1)[:, :limit]
    return jnp.concatenate([out[:, ::-1], target], axis=1)


# ---------------------------------------------------------------------------
if __name__ == "__main__":
    key = jax.random.PRNGKey(0)
    B = 2
    D = 32              # input_dim
    Dh = D // 2
    O = 64              # number of "other" tokens
    T = 8               # num_target_tokens
    L = O + T
    LIMIT = 40

    kx, k1, k2, k3, k4 = jax.random.split(key, 5)
    x = jax.random.normal(kx, (B, L, D), dtype=jnp.float32)

    # Deterministic nn.Linear-style init (U(-1/sqrt(fan_in), 1/sqrt(fan_in))).
    bound = 1.0 / (Dh ** 0.5)
    wq = jax.random.uniform(k1, (Dh, PROJ_DIM), minval=-bound, maxval=bound, dtype=jnp.float32)
    bq = jax.random.uniform(k2, (PROJ_DIM,), minval=-bound, maxval=bound, dtype=jnp.float32)
    wk = jax.random.uniform(k3, (Dh, PROJ_DIM), minval=-bound, maxval=bound, dtype=jnp.float32)
    bk = jax.random.uniform(k4, (PROJ_DIM,), minval=-bound, maxval=bound, dtype=jnp.float32)
    params = (wq, bq, wk, bk)

    # Full-f32 path: check against the pure-JAX transliteration.
    fwd_f32 = jax.jit(functools.partial(
        token_fusion_forward, num_target_tokens=T, limit=LIMIT,
        fusion_ratio=0.25, init_reduce_rate=4, input_dtype=None))
    out_f32 = jax.block_until_ready(fwd_f32(x, params))
    ref = jax.block_until_ready(reference_forward(x, params, T, LIMIT, 0.25, 4))
    assert out_f32.shape == ref.shape
    assert bool(jnp.allclose(out_f32, ref, rtol=1e-2, atol=1e-3))

    # Default path (bf16 DMA'd token operands, f32 accumulation / scores).
    fwd = jax.jit(functools.partial(
        token_fusion_forward, num_target_tokens=T, limit=LIMIT,
        fusion_ratio=0.25, init_reduce_rate=4))
    out = jax.block_until_ready(fwd(x, params))
    assert out.shape == ref.shape and out.shape[0] == B and out.shape[2] == D
    assert bool(jnp.all(jnp.isfinite(out)))
    print("KERNEL_OK")
</pallas_src>

<mosaic_0001>
module attributes {stable_mosaic.version = 11 : i64} {
  func.func @_scores_kernel(%arg0: i32, %arg1: i32, %arg2: memref<1x128x16xf32, #tpu.memory_space<vmem>>, %arg3: memref<1x8x32xf32, #tpu.memory_space<vmem>>, %arg4: memref<16x32xf32, #tpu.memory_space<vmem>>, %arg5: memref<1x32xf32, #tpu.memory_space<vmem>>, %arg6: memref<1x1x128xf32, #tpu.memory_space<vmem>>) attributes {dimension_semantics = [#tpu.dimension_semantics<parallel>, #tpu.dimension_semantics<parallel>], iteration_bounds = array<i64: 2, 1>, scalar_prefetch = 0 : i64, scratch_operands = 0 : i64, tpu.core_type = #tpu.core_type<tc>, window_params = [{transform_indices = @transform_0, window_bounds = array<i64: 1, 128, 16>}, {transform_indices = @transform_1, window_bounds = array<i64: 1, 8, 32>}, {pipeline_mode = #tpu.pipeline_mode<synchronous>, transform_indices = @transform_2, window_bounds = array<i64: 16, 32>}, {pipeline_mode = #tpu.pipeline_mode<synchronous>, transform_indices = @transform_3, window_bounds = array<i64: 1, 32>}, {transform_indices = @transform_4, window_bounds = array<i64: 1, 1, 128>}]} {
    %c0 = arith.constant 0 : index
    %c0_0 = arith.constant 0 : index
    %c0_1 = arith.constant 0 : index
    %0 = vector.load %arg2[%c0, %c0_0, %c0_1] : memref<1x128x16xf32, #tpu.memory_space<vmem>>, vector<1x128x16xf32>
    %1 = vector.shape_cast %0 : vector<1x128x16xf32> to vector<128x16xf32>
    %c0_2 = arith.constant 0 : index
    %c0_3 = arith.constant 0 : index
    %2 = vector.load %arg4[%c0_2, %c0_3] : memref<16x32xf32, #tpu.memory_space<vmem>>, vector<16x32xf32>
    %cst = arith.constant dense<0.000000e+00> : vector<128x32xf32>
    %3 = tpu.matmul %1, %2, %cst {dimension_numbers = #tpu.dot_dimension_numbers<[1], [0], [0], [1], [0, 0, 1, 1], [], []>} : vector<128x16xf32>, vector<16x32xf32>, vector<128x32xf32> -> vector<128x32xf32>
    %c0_4 = arith.constant 0 : index
    %c0_5 = arith.constant 0 : index
    %4 = vector.load %arg5[%c0_4, %c0_5] : memref<1x32xf32, #tpu.memory_space<vmem>>, vector<1x32xf32>
    %5 = vector.broadcast %4 : vector<1x32xf32> to vector<128x32xf32>
    %6 = arith.addf %3, %5 : vector<128x32xf32>
    %7 = arith.mulf %6, %6 : vector<128x32xf32>
    %cst_6 = arith.constant dense<0.000000e+00> : vector<128xf32>
    %8 = vector.multi_reduction <add>, %7, %cst_6 [1] : vector<128x32xf32> to vector<128xf32>
    %9 = vector.shape_cast %8 : vector<128xf32> to vector<128x1xf32>
    %cst_7 = arith.constant 9.99999996E-13 : f32
    %10 = vector.broadcast %cst_7 : f32 to vector<128x1xf32>
    %11 = arith.addf %9, %10 : vector<128x1xf32>
    %12 = math.rsqrt %11 : vector<128x1xf32>
    %13 = vector.broadcast %12 : vector<128x1xf32> to vector<128x32xf32>
    %14 = arith.mulf %6, %13 : vector<128x32xf32>
    %c0_8 = arith.constant 0 : index
    %c0_9 = arith.constant 0 : index
    %c0_10 = arith.constant 0 : index
    %15 = vector.load %arg3[%c0_8, %c0_9, %c0_10] : memref<1x8x32xf32, #tpu.memory_space<vmem>>, vector<1x8x32xf32>
    %16 = vector.shape_cast %15 : vector<1x8x32xf32> to vector<8x32xf32>
    %cst_11 = arith.constant dense<0.000000e+00> : vector<8x128xf32>
    %17 = tpu.matmul %16, %14, %cst_11 {dimension_numbers = #tpu.dot_dimension_numbers<[1], [1], [0], [0], [0, 0, 1, 0], [], []>} : vector<8x32xf32>, vector<128x32xf32>, vector<8x128xf32> -> vector<8x128xf32>
    %cst_12 = arith.constant 0.000000e+00 : f32
    %18 = vector.broadcast %cst_12 : f32 to vector<8x128xf32>
    %19 = arith.maximumf %17, %18 : vector<8x128xf32>
    %cst_13 = arith.constant dense<0.000000e+00> : vector<128xf32>
    %20 = vector.multi_reduction <add>, %19, %cst_13 [0] : vector<8x128xf32> to vector<128xf32>
    %21 = vector.shape_cast %20 : vector<128xf32> to vector<1x128xf32>
    %22 = vector.shape_cast %21 : vector<1x128xf32> to vector<1x1x128xf32>
    %c0_14 = arith.constant 0 : index
    %c0_15 = arith.constant 0 : index
    %c0_16 = arith.constant 0 : index
    %23 = vector.load %arg6[%c0_14, %c0_15, %c0_16] : memref<1x1x128xf32, #tpu.memory_space<vmem>>, vector<1x1x128xf32>
    tpu.vector_store %arg6[%c0_14, %c0_15, %c0_16], %22 {strides = array<i32>} : memref<1x1x128xf32, #tpu.memory_space<vmem>>, vector<1x1x128xf32>,
    return
  }
  func.func @transform_0(%arg0: i32, %arg1: i32) -> (i32, i32, i32) {
    %c0_i32 = arith.constant 0 : i32
    %c0_i32_0 = arith.constant 0 : i32
    return %arg0, %arg1, %c0_i32 : i32, i32, i32
  }
  func.func @transform_1(%arg0: i32, %arg1: i32) -> (i32, i32, i32) {
    %c0_i32 = arith.constant 0 : i32
    %c0_i32_0 = arith.constant 0 : i32
    %c0_i32_1 = arith.constant 0 : i32
    return %arg0, %c0_i32, %c0_i32_0 : i32, i32, i32
  }
  func.func @transform_2(%arg0: i32, %arg1: i32) -> (i32, i32) {
    %c0_i32 = arith.constant 0 : i32
    %c0_i32_0 = arith.constant 0 : i32
    %c0_i32_1 = arith.constant 0 : i32
    return %c0_i32, %c0_i32_0 : i32, i32
  }
  func.func @transform_3(%arg0: i32, %arg1: i32) -> (i32, i32) {
    %c0_i32 = arith.constant 0 : i32
    %c0_i32_0 = arith.constant 0 : i32
    %c0_i32_1 = arith.constant 0 : i32
    return %c0_i32, %c0_i32_0 : i32, i32
  }
  func.func @transform_4(%arg0: i32, %arg1: i32) -> (i32, i32, i32) {
    %c0_i32 = arith.constant 0 : i32
    %c0_i32_0 = arith.constant 0 : i32
    return %arg0, %c0_i32, %arg1 : i32, i32, i32
  }
}

module attributes {stable_mosaic.version = 11 : i64} {
  func.func @_group_fuse_kernel(%arg0: i32, %arg1: i32, %arg2: memref<1x1x4x128xbf16, #tpu.memory_space<vmem>>, %arg3: memref<1x1x4xf32, #tpu.memory_space<vmem>>, %arg4: memref<1x1x128xf32, #tpu.memory_space<vmem>>) attributes {dimension_semantics = [#tpu.dimension_semantics<parallel>, #tpu.dimension_semantics<parallel>], iteration_bounds = array<i64: 2, 1>, scalar_prefetch = 0 : i64, scratch_operands = 0 : i64, tpu.core_type = #tpu.core_type<tc>, window_params = [{transform_indices = @transform_0, window_bounds = array<i64: 1, 1, 4, 128>}, {transform_indices = @transform_1, window_bounds = array<i64: 1, 1, 4>}, {transform_indices = @transform_2, window_bounds = array<i64: 1, 1, 128>}]} {
    %c0 = arith.constant 0 : index
    %c0_0 = arith.constant 0 : index
    %c0_1 = arith.constant 0 : index
    %c0_2 = arith.constant 0 : index
    %0 = vector.load %arg2[%c0, %c0_0, %c0_1, %c0_2] : memref<1x1x4x128xbf16, #tpu.memory_space<vmem>>, vector<1x1x4x128xbf16>
    %1 = vector.shape_cast %0 : vector<1x1x4x128xbf16> to vector<1x4x128xbf16>
    %2 = arith.extf %1 : vector<1x4x128xbf16> to vector<1x4x128xf32>
    %c0_3 = arith.constant 0 : index
    %c0_4 = arith.constant 0 : index
    %c0_5 = arith.constant 0 : index
    %3 = vector.load %arg3[%c0_3, %c0_4, %c0_5] : memref<1x1x4xf32, #tpu.memory_space<vmem>>, vector<1x1x4xf32>
    %4 = vector.shape_cast %3 : vector<1x1x4xf32> to vector<1x4xf32>
    %cst = arith.constant dense<0xFF800000> : vector<1xf32>
    %5 = vector.multi_reduction <maximumf>, %4, %cst [1] : vector<1x4xf32> to vector<1xf32>
    %6 = vector.shape_cast %5 : vector<1xf32> to vector<1x1xf32>
    %7 = vector.broadcast %6 : vector<1x1xf32> to vector<1x4xf32>
    %8 = arith.subf %4, %7 : vector<1x4xf32>
    %9 = math.exp %8 : vector<1x4xf32>
    %cst_6 = arith.constant dense<0.000000e+00> : vector<1xf32>
    %10 = vector.multi_reduction <add>, %9, %cst_6 [1] : vector<1x4xf32> to vector<1xf32>
    %11 = vector.shape_cast %10 : vector<1xf32> to vector<1x1xf32>
    %12 = vector.broadcast %11 : vector<1x1xf32> to vector<1x4xf32>
    %13 = arith.divf %9, %12 : vector<1x4xf32>
    %14 = vector.shape_cast %13 : vector<1x4xf32> to vector<1x4x1xf32>
    %15 = vector.broadcast %14 : vector<1x4x1xf32> to vector<1x4x128xf32>
    %16 = arith.mulf %2, %15 : vector<1x4x128xf32>
    %cst_7 = arith.constant dense<0.000000e+00> : vector<1x128xf32>
    %17 = vector.multi_reduction <add>, %16, %cst_7 [1] : vector<1x4x128xf32> to vector<1x128xf32>
    %18 = arith.mulf %4, %13 : vector<1x4xf32>
    %cst_8 = arith.constant dense<0.000000e+00> : vector<1xf32>
    %19 = vector.multi_reduction <add>, %18, %cst_8 [1] : vector<1x4xf32> to vector<1xf32>
    %20 = vector.shape_cast %19 : vector<1xf32> to vector<1x1xf32>
    %21 = vector.broadcast %20 : vector<1x1xf32> to vector<1x128xf32>
    %22 = arith.mulf %17, %21 : vector<1x128xf32>
    %23 = vector.shape_cast %22 : vector<1x128xf32> to vector<1x1x128xf32>
    %c0_9 = arith.constant 0 : index
    %c0_10 = arith.constant 0 : index
    %c0_11 = arith.constant 0 : index
    %24 = vector.load %arg4[%c0_9, %c0_10, %c0_11] : memref<1x1x128xf32, #tpu.memory_space<vmem>>, vector<1x1x128xf32>
    tpu.vector_store %arg4[%c0_9, %c0_10, %c0_11], %23 {strides = array<i32>} : memref<1x1x128xf32, #tpu.memory_space<vmem>>, vector<1x1x128xf32>,
    return
  }
  func.func @transform_0(%arg0: i32, %arg1: i32) -> (i32, i32, i32, i32) {
    %c0_i32 = arith.constant 0 : i32
    %c0_i32_0 = arith.constant 0 : i32
    %c0_i32_1 = arith.constant 0 : i32
    return %arg0, %arg1, %c0_i32, %c0_i32_0 : i32, i32, i32, i32
  }
  func.func @transform_1(%arg0: i32, %arg1: i32) -> (i32, i32, i32) {
    %c0_i32 = arith.constant 0 : i32
    %c0_i32_0 = arith.constant 0 : i32
    return %arg0, %arg1, %c0_i32 : i32, i32, i32
  }
  func.func @transform_2(%arg0: i32, %arg1: i32) -> (i32, i32, i32) {
    %c0_i32 = arith.constant 0 : i32
    %c0_i32_0 = arith.constant 0 : i32
    return %arg0, %arg1, %c0_i32 : i32, i32, i32
  }
}

module attributes {stable_mosaic.version = 11 : i64} {
  func.func @_group_fuse_kernel(%arg0: i32, %arg1: i32, %arg2: memref<1x1x16x128xbf16, #tpu.memory_space<vmem>>, %arg3: memref<1x1x16xf32, #tpu.memory_space<vmem>>, %arg4: memref<1x1x128xf32, #tpu.memory_space<vmem>>) attributes {dimension_semantics = [#tpu.dimension_semantics<parallel>, #tpu.dimension_semantics<parallel>], iteration_bounds = array<i64: 2, 1>, scalar_prefetch = 0 : i64, scratch_operands = 0 : i64, tpu.core_type = #tpu.core_type<tc>, window_params = [{transform_indices = @transform_0, window_bounds = array<i64: 1, 1, 16, 128>}, {transform_indices = @transform_1, window_bounds = array<i64: 1, 1, 16>}, {transform_indices = @transform_2, window_bounds = array<i64: 1, 1, 128>}]} {
    %c0 = arith.constant 0 : index
    %c0_0 = arith.constant 0 : index
    %c0_1 = arith.constant 0 : index
    %c0_2 = arith.constant 0 : index
    %0 = vector.load %arg2[%c0, %c0_0, %c0_1, %c0_2] : memref<1x1x16x128xbf16, #tpu.memory_space<vmem>>, vector<1x1x16x128xbf16>
    %1 = vector.shape_cast %0 : vector<1x1x16x128xbf16> to vector<1x16x128xbf16>
    %2 = arith.extf %1 : vector<1x16x128xbf16> to vector<1x16x128xf32>
    %c0_3 = arith.constant 0 : index
    %c0_4 = arith.constant 0 : index
    %c0_5 = arith.constant 0 : index
    %3 = vector.load %arg3[%c0_3, %c0_4, %c0_5] : memref<1x1x16xf32, #tpu.memory_space<vmem>>, vector<1x1x16xf32>
    %4 = vector.shape_cast %3 : vector<1x1x16xf32> to vector<1x16xf32>
    %cst = arith.constant dense<0xFF800000> : vector<1xf32>
    %5 = vector.multi_reduction <maximumf>, %4, %cst [1] : vector<1x16xf32> to vector<1xf32>
    %6 = vector.shape_cast %5 : vector<1xf32> to vector<1x1xf32>
    %7 = vector.broadcast %6 : vector<1x1xf32> to vector<1x16xf32>
    %8 = arith.subf %4, %7 : vector<1x16xf32>
    %9 = math.exp %8 : vector<1x16xf32>
    %cst_6 = arith.constant dense<0.000000e+00> : vector<1xf32>
    %10 = vector.multi_reduction <add>, %9, %cst_6 [1] : vector<1x16xf32> to vector<1xf32>
    %11 = vector.shape_cast %10 : vector<1xf32> to vector<1x1xf32>
    %12 = vector.broadcast %11 : vector<1x1xf32> to vector<1x16xf32>
    %13 = arith.divf %9, %12 : vector<1x16xf32>
    %14 = vector.shape_cast %13 : vector<1x16xf32> to vector<1x16x1xf32>
    %15 = vector.broadcast %14 : vector<1x16x1xf32> to vector<1x16x128xf32>
    %16 = arith.mulf %2, %15 : vector<1x16x128xf32>
    %cst_7 = arith.constant dense<0.000000e+00> : vector<1x128xf32>
    %17 = vector.multi_reduction <add>, %16, %cst_7 [1] : vector<1x16x128xf32> to vector<1x128xf32>
    %18 = arith.mulf %4, %13 : vector<1x16xf32>
    %cst_8 = arith.constant dense<0.000000e+00> : vector<1xf32>
    %19 = vector.multi_reduction <add>, %18, %cst_8 [1] : vector<1x16xf32> to vector<1xf32>
    %20 = vector.shape_cast %19 : vector<1xf32> to vector<1x1xf32>
    %21 = vector.broadcast %20 : vector<1x1xf32> to vector<1x128xf32>
    %22 = arith.mulf %17, %21 : vector<1x128xf32>
    %23 = vector.shape_cast %22 : vector<1x128xf32> to vector<1x1x128xf32>
    %c0_9 = arith.constant 0 : index
    %c0_10 = arith.constant 0 : index
    %c0_11 = arith.constant 0 : index
    %24 = vector.load %arg4[%c0_9, %c0_10, %c0_11] : memref<1x1x128xf32, #tpu.memory_space<vmem>>, vector<1x1x128xf32>
    tpu.vector_store %arg4[%c0_9, %c0_10, %c0_11], %23 {strides = array<i32>} : memref<1x1x128xf32, #tpu.memory_space<vmem>>, vector<1x1x128xf32>,
    return
  }
  func.func @transform_0(%arg0: i32, %arg1: i32) -> (i32, i32, i32, i32) {
    %c0_i32 = arith.constant 0 : i32
    %c0_i32_0 = arith.constant 0 : i32
    %c0_i32_1 = arith.constant 0 : i32
    return %arg0, %arg1, %c0_i32, %c0_i32_0 : i32, i32, i32, i32
  }
  func.func @transform_1(%arg0: i32, %arg1: i32) -> (i32, i32, i32) {
    %c0_i32 = arith.constant 0 : i32
    %c0_i32_0 = arith.constant 0 : i32
    return %arg0, %arg1, %c0_i32 : i32, i32, i32
  }
  func.func @transform_2(%arg0: i32, %arg1: i32) -> (i32, i32, i32) {
    %c0_i32 = arith.constant 0 : i32
    %c0_i32_0 = arith.constant 0 : i32
    return %arg0, %arg1, %c0_i32 : i32, i32, i32
  }
}

</mosaic_0001>

<bundles_post_ra>
// kernel: neg.1
= control target key start
LH: loop header
LB: loop body
LE: loop exit
PB: predicated region body
PF: predicated region fallthrough
CT: control target
= control target key end

     0   :  { %s24_s0 = inlined_call_operand.vmem [shape: f32[2,64], index: 0, kind: input, shape index: {}]   ;;  %s25_s1 = inlined_call_operand.vmem [shape: f32[2,64], index: 1, kind: output, shape index: {}]  }
   0x1   :  { %v2_v0 = vld [vmem:[%s24_s0] sm:$0x3] }
   0x2   :  { %v5_v1 = vxor.u32 2147483648, %v2_v0 }
   0x4   :  { %7 = vst [vmem:[%s25_s1] sm:$0x3] %v5_v1 }

</bundles_post_ra>
